<compile_context>
chip_gen: v7x
topology: tpu7x:2x2x1
jax: 0.10.0
libtpu: 0.0.40
codegen_flags: <defaults>
</compile_context>

<pallas_src>
import functools

import jax
import jax.numpy as jnp
from jax.experimental import pallas as pl
from jax.experimental.pallas import tpu as pltpu


def _head_kernel(x_ref, gram_ref, grow_ref, wt_ref, bt_ref, bsq_ref, o_ref):
    # x_ref   : (TM, Cin)  pixel-decoder features (pixel tile)
    # gram_ref: (Cin, Cin) W @ W.T
    # grow_ref: (1, Cin)   2 * W @ b
    # wt_ref  : (Cin, Kp)  logit_scale * W @ T_pad.T
    # bt_ref  : (1, Kp)    logit_scale * b @ T_pad.T
    # bsq_ref : (1,) SMEM  ||b||^2
    # o_ref   : (TM, Kp)   per-pixel class logits
    x = x_ref[...]

    # squared norm of the projected feature via the Gram matrix:
    #   ||x W + b||^2 = x (W W^T) x^T + 2 x (W b) + ||b||^2
    xg = jnp.dot(x, gram_ref[...], preferred_element_type=jnp.float32)
    xg = xg + grow_ref[...]
    sq = jnp.sum(x * xg, axis=-1, keepdims=True) + bsq_ref[0]
    inv_norm = jax.lax.rsqrt(jnp.maximum(sq, 1e-12))  # eps guards all-zero pixels

    # class logits (logit_scale already folded into Wt / bt)
    logits = jnp.dot(x, wt_ref[...], preferred_element_type=jnp.float32)
    logits = logits + bt_ref[...]
    o_ref[...] = (logits * inv_norm).astype(o_ref.dtype)


def prepare_head_params(proj_w, proj_b, text_features, logit_scale):
    """One-time (weight-load) precompute.

    proj_w        : (mask_dim, text_dim) 1x1-conv weight as a matmul (Cin, Cp)
    proj_b        : (text_dim,)          1x1-conv bias
    text_features : (num_classes, text_dim), L2-normalized rows
    logit_scale   : python float, exp(log(1/temperature)) = 1/temperature
    """
    proj_w = jnp.asarray(proj_w, jnp.float32)
    proj_b = jnp.asarray(proj_b, jnp.float32)
    text_features = jnp.asarray(text_features, jnp.float32)

    cin, _ = proj_w.shape
    k = text_features.shape[0]
    kp = ((k + 127) // 128) * 128  # lane-dense class dim; padded classes are zero

    t_pad = jnp.zeros((kp, text_features.shape[1]), jnp.float32).at[:k].set(text_features)
    scale = jnp.float32(logit_scale)

    params = dict(
        wt=(proj_w @ t_pad.T) * scale,                 # (Cin, Kp)
        bt=((proj_b @ t_pad.T) * scale)[None, :],      # (1, Kp)
        gram=proj_w @ proj_w.T,                        # (Cin, Cin)
        g_row=(2.0 * (proj_w @ proj_b))[None, :],      # (1, Cin)
        b_sq=jnp.sum(proj_b * proj_b).reshape(1),      # (1,)
    )
    return params, k


@functools.partial(jax.jit, static_argnames=("num_classes", "tile_m", "common_stride"))
def per_pixel_baseline_head(features_nchw, params, *, num_classes,
                            tile_m=512, common_stride=4):
    """Inference forward of PerPixelBaselineHead (after the pixel decoder).

    features_nchw : (N, mask_dim, H, W) float32 -- pixel decoder output
    returns       : (N, num_classes, H*common_stride, W*common_stride) float32
    """
    n, cin, h, w = features_nchw.shape
    wt, bt = params["wt"], params["bt"]
    gram, g_row, b_sq = params["gram"], params["g_row"], params["b_sq"]
    kp = wt.shape[1]
    k = num_classes
    p = n * h * w

    # NCHW -> pixel-major (P, Cin)  == permute(0,2,3,1).reshape(N*H*W, C)
    x = jnp.transpose(features_nchw, (0, 2, 3, 1)).reshape(p, cin).astype(jnp.float32)

    # Tile selection: large tiles amortize per-grid-step overhead; keep >= 2
    # grid steps so v7x can shard the "parallel" pixel axis over its 2 TCs;
    # sublane(8)-align and pad the pixel rows if needed.
    tm = min(tile_m, max(8, pl.cdiv(p, 2)))
    tm = max(8, (tm // 8) * 8)
    pp = pl.cdiv(p, tm) * tm
    if pp != p:
        x = jnp.pad(x, ((0, pp - p), (0, 0)))

    cost = pl.CostEstimate(
        flops=2 * pp * cin * (kp + cin),
        transcendentals=pp,
        bytes_accessed=4 * (pp * cin + pp * kp + cin * cin + cin + cin * kp + kp + 1),
    )

    out = pl.pallas_call(
        _head_kernel,
        out_shape=jax.ShapeDtypeStruct((pp, kp), jnp.float32),
        grid=(pp // tm,),
        in_specs=[
            pl.BlockSpec((tm, cin), lambda i: (i, 0)),      # pixel tile
            pl.BlockSpec((cin, cin), lambda i: (0, 0)),     # Gram = W W^T
            pl.BlockSpec((1, cin), lambda i: (0, 0)),       # 2 W b
            pl.BlockSpec((cin, kp), lambda i: (0, 0)),      # scale * W T^T
            pl.BlockSpec((1, kp), lambda i: (0, 0)),        # scale * b T^T
            pl.BlockSpec(memory_space=pltpu.MemorySpace.SMEM),  # ||b||^2
        ],
        out_specs=pl.BlockSpec((tm, kp), lambda i: (i, 0)),
        compiler_params=pltpu.CompilerParams(
            dimension_semantics=("parallel",)),
        cost_estimate=cost,
    )(x, gram, g_row, wt, bt, b_sq)

    # (Pp, Kp) -> (N, H, W, K); bilinear 4x upsample in NHWC (classes stay on
    # lanes), then a single transpose to NCHW at the end.
    logits = out[:p, :k].reshape(n, h, w, k)
    logits_up = jax.image.resize(
        logits, (n, h * common_stride, w * common_stride, k), method="bilinear")
    return jnp.transpose(logits_up, (0, 3, 1, 2))


def _reference(features_nchw, proj_w, proj_b, text_features, logit_scale,
               common_stride=4):
    n, cin, h, w = features_nchw.shape
    k = text_features.shape[0]
    x = jnp.transpose(features_nchw, (0, 2, 3, 1)).reshape(n * h * w, cin)
    proj = x @ proj_w + proj_b
    proj = proj / jnp.linalg.norm(proj, axis=-1, keepdims=True)
    logits = logit_scale * (proj @ text_features.T)
    logits = logits.reshape(n, h, w, k).transpose(0, 3, 1, 2)
    return jax.image.resize(
        logits, (n, k, h * common_stride, w * common_stride), method="bilinear")


if __name__ == "__main__":
    # small, module-consistent shapes
    N, mask_dim, H, W = 2, 32, 16, 16          # pixel-decoder mask features
    text_dim = 512                              # wordvec=False -> Conv2d(mask_dim, 512, 1)
    num_classes = 16
    temperature = 0.01
    logit_scale = 1.0 / temperature             # exp(log(1/temperature)), frozen param

    key = jax.random.PRNGKey(0)
    k_x, k_w, k_t = jax.random.split(key, 3)

    features = jax.random.normal(k_x, (N, mask_dim, H, W), jnp.float32)

    # projection_layer: 1x1 conv, c2_msra_fill -> kaiming-normal weight, zero bias
    fan_out = text_dim
    proj_w = jax.random.normal(k_w, (mask_dim, text_dim), jnp.float32) * jnp.sqrt(2.0 / fan_out)
    proj_b = jnp.zeros((text_dim,), jnp.float32)

    # synthetic CLIP text embeddings, row-normalized (as in the module)
    text_features = jax.random.normal(k_t, (num_classes, text_dim), jnp.float32)
    text_features = text_features / jnp.linalg.norm(text_features, axis=-1, keepdims=True)

    params, K = prepare_head_params(proj_w, proj_b, text_features, logit_scale)

    out = per_pixel_baseline_head(features, params, num_classes=K)
    out = jax.block_until_ready(out)
    assert out.shape == (N, num_classes, H * 4, W * 4), out.shape

    ref = jax.block_until_ready(
        _reference(features, proj_w, proj_b, text_features, logit_scale))

    # logit_scale = 100 amplifies f32 rounding; the folded-weight / Gram-norm
    # rewrite reassociates the f32 math, so compare at ~1e-4 of the logit scale.
    max_err = float(jnp.max(jnp.abs(out - ref)))
    assert jnp.allclose(out, ref, rtol=1e-3, atol=1e-2), max_err

    print("KERNEL_OK")
</pallas_src>

<mosaic_0001>
module attributes {stable_mosaic.version = 11 : i64} {
  func.func @_head_kernel(%arg0: i32, %arg1: memref<256x32xf32, #tpu.memory_space<vmem>>, %arg2: memref<32x32xf32, #tpu.memory_space<vmem>>, %arg3: memref<1x32xf32, #tpu.memory_space<vmem>>, %arg4: memref<32x128xf32, #tpu.memory_space<vmem>>, %arg5: memref<1x128xf32, #tpu.memory_space<vmem>>, %arg6: memref<1xf32, #tpu.memory_space<smem>>, %arg7: memref<256x128xf32, #tpu.memory_space<vmem>>) attributes {dimension_semantics = [#tpu.dimension_semantics<parallel>], iteration_bounds = array<i64: 2>, scalar_prefetch = 0 : i64, scratch_operands = 0 : i64, tpu.core_type = #tpu.core_type<tc>, window_params = [{transform_indices = @transform_0, window_bounds = array<i64: 256, 32>}, {pipeline_mode = #tpu.pipeline_mode<synchronous>, transform_indices = @transform_1, window_bounds = array<i64: 32, 32>}, {pipeline_mode = #tpu.pipeline_mode<synchronous>, transform_indices = @transform_2, window_bounds = array<i64: 1, 32>}, {pipeline_mode = #tpu.pipeline_mode<synchronous>, transform_indices = @transform_3, window_bounds = array<i64: 32, 128>}, {pipeline_mode = #tpu.pipeline_mode<synchronous>, transform_indices = @transform_4, window_bounds = array<i64: 1, 128>}, {transform_indices = @transform_5, window_bounds = array<i64: 1>}, {transform_indices = @transform_6, window_bounds = array<i64: 256, 128>}]} {
    %c0 = arith.constant 0 : index
    %c0_0 = arith.constant 0 : index
    %0 = vector.load %arg1[%c0, %c0_0] : memref<256x32xf32, #tpu.memory_space<vmem>>, vector<256x32xf32>
    %c0_1 = arith.constant 0 : index
    %c0_2 = arith.constant 0 : index
    %1 = vector.load %arg2[%c0_1, %c0_2] : memref<32x32xf32, #tpu.memory_space<vmem>>, vector<32x32xf32>
    %cst = arith.constant dense<0.000000e+00> : vector<256x32xf32>
    %2 = tpu.matmul %0, %1, %cst {dimension_numbers = #tpu.dot_dimension_numbers<[1], [0], [0], [1], [0, 0, 1, 1], [], []>} : vector<256x32xf32>, vector<32x32xf32>, vector<256x32xf32> -> vector<256x32xf32>
    %c0_3 = arith.constant 0 : index
    %c0_4 = arith.constant 0 : index
    %3 = vector.load %arg3[%c0_3, %c0_4] : memref<1x32xf32, #tpu.memory_space<vmem>>, vector<1x32xf32>
    %4 = vector.broadcast %3 : vector<1x32xf32> to vector<256x32xf32>
    %5 = arith.addf %2, %4 : vector<256x32xf32>
    %6 = arith.mulf %0, %5 : vector<256x32xf32>
    %cst_5 = arith.constant dense<0.000000e+00> : vector<256xf32>
    %7 = vector.multi_reduction <add>, %6, %cst_5 [1] : vector<256x32xf32> to vector<256xf32>
    %8 = vector.shape_cast %7 : vector<256xf32> to vector<256x1xf32>
    %c0_6 = arith.constant 0 : index
    %9 = memref.load %arg6[%c0_6] : memref<1xf32, #tpu.memory_space<smem>>
    %10 = vector.broadcast %9 : f32 to vector<256x1xf32>
    %11 = arith.addf %8, %10 : vector<256x1xf32>
    %cst_7 = arith.constant 9.99999996E-13 : f32
    %12 = vector.broadcast %cst_7 : f32 to vector<256x1xf32>
    %13 = arith.maximumf %11, %12 : vector<256x1xf32>
    %14 = math.rsqrt %13 : vector<256x1xf32>
    %c0_8 = arith.constant 0 : index
    %c0_9 = arith.constant 0 : index
    %15 = vector.load %arg4[%c0_8, %c0_9] : memref<32x128xf32, #tpu.memory_space<vmem>>, vector<32x128xf32>
    %cst_10 = arith.constant dense<0.000000e+00> : vector<256x128xf32>
    %16 = tpu.matmul %0, %15, %cst_10 {dimension_numbers = #tpu.dot_dimension_numbers<[1], [0], [0], [1], [0, 0, 1, 1], [], []>} : vector<256x32xf32>, vector<32x128xf32>, vector<256x128xf32> -> vector<256x128xf32>
    %c0_11 = arith.constant 0 : index
    %c0_12 = arith.constant 0 : index
    %17 = vector.load %arg5[%c0_11, %c0_12] : memref<1x128xf32, #tpu.memory_space<vmem>>, vector<1x128xf32>
    %18 = vector.broadcast %17 : vector<1x128xf32> to vector<256x128xf32>
    %19 = arith.addf %16, %18 : vector<256x128xf32>
    %20 = vector.broadcast %14 : vector<256x1xf32> to vector<256x128xf32>
    %21 = arith.mulf %19, %20 : vector<256x128xf32>
    %c0_13 = arith.constant 0 : index
    %c0_14 = arith.constant 0 : index
    %22 = vector.load %arg7[%c0_13, %c0_14] : memref<256x128xf32, #tpu.memory_space<vmem>>, vector<256x128xf32>
    tpu.vector_store %arg7[%c0_13, %c0_14], %21 {strides = array<i32>} : memref<256x128xf32, #tpu.memory_space<vmem>>, vector<256x128xf32>,
    return
  }
  func.func @transform_0(%arg0: i32) -> (i32, i32) {
    %c0_i32 = arith.constant 0 : i32
    %c0_i32_0 = arith.constant 0 : i32
    return %arg0, %c0_i32 : i32, i32
  }
  func.func @transform_1(%arg0: i32) -> (i32, i32) {
    %c0_i32 = arith.constant 0 : i32
    %c0_i32_0 = arith.constant 0 : i32
    %c0_i32_1 = arith.constant 0 : i32
    return %c0_i32, %c0_i32_0 : i32, i32
  }
  func.func @transform_2(%arg0: i32) -> (i32, i32) {
    %c0_i32 = arith.constant 0 : i32
    %c0_i32_0 = arith.constant 0 : i32
    %c0_i32_1 = arith.constant 0 : i32
    return %c0_i32, %c0_i32_0 : i32, i32
  }
  func.func @transform_3(%arg0: i32) -> (i32, i32) {
    %c0_i32 = arith.constant 0 : i32
    %c0_i32_0 = arith.constant 0 : i32
    %c0_i32_1 = arith.constant 0 : i32
    return %c0_i32, %c0_i32_0 : i32, i32
  }
  func.func @transform_4(%arg0: i32) -> (i32, i32) {
    %c0_i32 = arith.constant 0 : i32
    %c0_i32_0 = arith.constant 0 : i32
    %c0_i32_1 = arith.constant 0 : i32
    return %c0_i32, %c0_i32_0 : i32, i32
  }
  func.func @transform_5(%arg0: i32) -> i32 {
    %c0_i32 = arith.constant 0 : i32
    %c0_i32_0 = arith.constant 0 : i32
    return %c0_i32 : i32
  }
  func.func @transform_6(%arg0: i32) -> (i32, i32) {
    %c0_i32 = arith.constant 0 : i32
    %c0_i32_0 = arith.constant 0 : i32
    return %arg0, %c0_i32 : i32, i32
  }
}

</mosaic_0001>

<bundles_post_ra>
// kernel: per_pixel_baseline_head.1
= control target key start
LH: loop header
LB: loop body
LE: loop exit
PB: predicated region body
PF: predicated region fallthrough
CT: control target
= control target key end

     0   :  { %s2487_s0 = inlined_call_operand.hbm [shape: f32[512,32], index: 0, kind: input, shape index: {}]   ;;  %s2488_s1 = inlined_call_operand.vmem [shape: f32[32,32], index: 1, kind: input, shape index: {}]   ;;  %s2489_s2 = inlined_call_operand.vmem [shape: f32[1,32], index: 2, kind: input, shape index: {}]   ;;  %s2490_s3 = inlined_call_operand.hbm [shape: f32[32,128], index: 3, kind: input, shape index: {}]   ;;  %s2491_s4 = inlined_call_operand.vmem [shape: f32[1,128], index: 4, kind: input, shape index: {}]   ;;  %s2492_s5 = inlined_call_operand.<no memory space> [shape: f32[1], index: 5, kind: input, shape index: {}]   ;;  %s2493_s6 = inlined_call_operand.vmem [shape: f32[512,128], index: 6, kind: output, shape index: {}]  }
   0x1   :  { %11 = sst [smem:[#allocation2]] %s2492_s5 }
   0x2   :  { %12 = vsyncpa [#allocation4], 0 }
   0x3   :  { %14 = vsyncpa [#allocation4 + $0x1], 0 }
   0x4   :  { %15 = vsyncpa [#allocation6], 0  ;;  %s1796_s23 = smov 0   ;;  %s1798_s24 = smov 0  }
   0x5   :  { %s1800_s25 = smov 0   ;;  %s1802_s26 = smov 0  }
   0x6 LB: > { %s1258_s5 = sadd.s32 4294967295, %s1752_s26   ;;  %p41_p0 = scmp.ne.s32.totalorder %s1744_s24, %s1740_s23  ;;  %s1752_s26 = sphi %s1802_s26, %s2509_s26   ;;  %s1748_s25 = sphi %s1800_s25, %s2508_s25   ;;  %s1744_s24 = sphi %s1798_s24, %s2507_s24   ;;  %s1740_s23 = sphi %s1796_s23, %s2506_s23  }
   0x7   : > { %p1818_p1 = scmp.eq.s32.totalorder %s1258_s5, 0  ;;  %p1260_p2 = scmp.ge.s32.totalorder %s1752_s26, 1 }
   0x8   : > { %p183_p3 = scmp.lt.s32.totalorder %s1752_s26, 3  ;;  %s1754_s30 = smov [#allocation5]  }
   0x9   : > { %s2498_s27 = scalar_select %p1818_p1, 1, 0 }
   0xa   : > { %p1826_p4 = por %p1818_p1, %p41_p0  ;;  %p1830_p5 = pnand %p1260_p2, %p183_p3 }
   0xb   : > { %s201_s7 = sshll.u32 %s1754_s30, 4  ;;  %s1843_s9 = sadd.s32 1, %s1752_s26   ;;  %s202_s7 = int_to_ptr.vmem [resolvable:$true] %s201_s7 }
   0xc   : > { %s2499_s28 = scalar_select %p1826_p4, 1, 0 }
   0xd   : > { %s2500_s29 = scalar_select %p1830_p5, 1, 0 }
   0xe   : > { %p1546_p6 = pneg %p1830_p5  ;;  %s28_s10 = sadd.s32 1, %s1748_s25 }
   0xf   : > { %s25_s11 = ssub.s32 %s1752_s26, %s1843_s9  ;;  %s1656_s14 = scalar_lea.hbm %s2490_s3, 512 }
  0x10   : > { %p1838_p7 = pnand %p1546_p6, %p1818_p1  ;;  %p1657_p8 = scmp.ne.s32.totalorder %s2490_s3, %s1656_s14 }
  0x11   : > { %p1663_p12 = scmp.lt.u32.totalorder %s1656_s14, %s2490_s3 }
  0x12   : > { %p1658_p9 = pneg %p1838_p7 }
  0x14   : > { %p1659_p10 = pnand %p1658_p9, %p1657_p8 }
  0x16   : > { %p1660_p11 = pneg %p1659_p10 }
  0x18   : > { %p1665_p13 = pnand %p1663_p12, %p1660_p11 }
  0x1a   : > { %1668 = shalt.err (!%p1665_p13)
}
  0x1b   : > { %s1669_s19 = scalar_lea.vmem %s202_s7, 512  ;;  %p1677_p6 = scmp.lt.s32.totalorder %s202_s7, %s202_s7 }
  0x1c   : > { %p1670_p0 = scmp.ne.s32.totalorder %s202_s7, %s1669_s19  ;;  %p1678_p1 = scmp.lt.s32.totalorder %s1669_s19, %s1669_s19 }
  0x1e   : > { %p1672_p2 = pnand %p1670_p0, %p1658_p9  ;;  %p1679_p4 = por %p1678_p1, %p1677_p6 }
  0x20   : > { %p1673_p3 = pneg %p1672_p2 }
  0x22   : > { %p1680_p5 = pnand %p1679_p4, %p1673_p3 }
  0x24   : > { %1683 = shalt.err (!%p1680_p5)
}
  0x25   : > { %s1755_s20 = smov 128   ;;  %s1756_s21 = smov 8  }
  0x26   : > { %1549 = dma.hbm_to_vmem [thread:$0]  (!%p1838_p7), %s2490_s3, 512, %s202_s7, [#allocation6], %s1755_s20, %s1755_s20, %s1756_s21  }
  0x27   : > { %p26_p1 = scmp.eq.s32.totalorder %s25_s11, 0  ;;  %p35_p4 = scmp.ne.s32.totalorder %s1748_s25, %s1744_s24 }
  0x28   : > { %p36_p5 = scmp.eq.s32.totalorder %s1752_s26, 0  ;;  %p1555_p8 = scmp.lt.s32.totalorder %s1752_s26, 2 }
  0x29   : > { %s1872_s30 = scalar_select %p26_p1, %s1748_s25, %s28_s10  }
  0x2a   : > { %p37_p9 = por %p36_p5, %p35_p4  ;;  %s221_s12 = sand.u32 1, %s1748_s25  }
  0x2b   : > { %s1263_s13 = sshll.u32 %s221_s12, 8  ;;  %s1339_s14 = sshll.u32 %s1752_s26, 12 }
  0x2c   : > { %s1879_s8 = scalar_lea.hbm %s2487_s0, %s1339_s14  ;;  %s225_s7 = scalar_lea.vmem [#allocation3], %s1263_s13 }
  0x2d   : > { %s232_s11 = sshll.u32 %s225_s7, 4  ;;  %p1883_p7 = pnand %p1555_p8, %p37_p9  ;;  %s1881_s11 = int_to_ptr.vmem [resolvable:$true] %s232_s11 }
  0x2e   : > { %s1887_s17 = scalar_lea.sflag [#allocation4], %s221_s12  ;;  %s1684_s18 = scalar_lea.hbm %s1879_s8, 4096 }
  0x2f   : > { %p1685_p10 = scmp.ne.s32.totalorder %s1879_s8, %s1684_s18  ;;  %p1686_p11 = pneg %p1883_p7 }
  0x30   : > { %s1689_s23 = scalar_lea.hbm %s2487_s0, 8192  ;;  %p1690_p0 = scmp.lt.u32.totalorder %s1879_s8, %s2487_s0 }
  0x31   : > { %p1687_p12 = pnand %p1686_p11, %p1685_p10  ;;  %p1691_p2 = scmp.lt.u32.totalorder %s1689_s23, %s1684_s18 }
  0x32   : > { %p1693_p6 = scmp.lt.u32.totalorder %s1684_s18, %s1879_s8 }
  0x33   : > { %p1688_p13 = pneg %p1687_p12  ;;  %p1692_p3 = por %p1691_p2, %p1690_p0 }
  0x35   : > { %p1694_p1 = por %p1693_p6, %p1692_p3 }
  0x37   : > { %p1695_p4 = pnand %p1694_p1, %p1688_p13 }
  0x39   : > { %1698 = shalt.err (!%p1695_p4)
}
  0x3a   : > { %s1699_s12 = scalar_lea.vmem %s1881_s11, 4096  ;;  %s1757_s15 = smov [#allocation3]  }
  0x3b   : > { %p1700_p5 = scmp.ne.s32.totalorder %s1881_s11, %s1699_s12  ;;  %s1704_s16 = sshll.u32 %s1757_s15, 4  ;;  %s1705_s16 = int_to_ptr.vmem [resolvable:$false] %s1704_s16 }
  0x3c   : > { %s1706_s7 = scalar_lea.vmem %s1705_s16, 8192  ;;  %p1707_p10 = scmp.lt.s32.totalorder %s1881_s11, %s1705_s16 }
  0x3d   : > { %p1702_p8 = pnand %p1700_p5, %p1686_p11  ;;  %p1708_p12 = scmp.lt.s32.totalorder %s1706_s7, %s1699_s12 }
  0x3f   : > { %p1703_p9 = pneg %p1702_p8  ;;  %p1709_p0 = por %p1708_p12, %p1707_p10 }
  0x41   : > { %p1710_p2 = pnand %p1709_p0, %p1703_p9 }
  0x43   : > { %1713 = shalt.err (!%p1710_p2)
}
  0x44   : > { %1553 = dma.hbm_to_vmem [thread:$0]  (!%p1883_p7), %s1879_s8, 4096, %s1881_s11, %s1887_s17, %s1755_s20, %s1755_s20, %s1756_s21  }
  0x45   : > { %p2503_p11 = scmp.ne.s32.totalorder %s2500_s29, 0 }
  0x46   : > { %s246_s18 = sand.u32 (!%p2503_p11), 1, %s1744_s24   ;;  %p2504_p13 = scmp.ne.s32.totalorder (!%p2503_p11), %s2499_s28, 0 }
  0x47   : > { %244 = sbr.rel (%p2503_p11) target bundleno = 534 (0x216), region = 44  ;;  %s1267_s19 = sshll.u32 (!%p2503_p11), %s246_s18, 8 }
  0x48   : > { %s247_s22 = scalar_lea.sflag (!%p2503_p11), [#allocation4], %s246_s18  ;;  %s1921_s23 = scalar_lea.vmem (!%p2503_p11), [#allocation3], %s1267_s19 }
  0x4e   : > { %1731 = dma.done.wait (%p2504_p13), %s247_s22, 4096  }
  0x4f   : > { %1733 = vsyncadd (%p2504_p13), %s247_s22, 4294963200  ;;  %p2505_p3 = scmp.ne.s32.totalorder %s2498_s27, 0 }
  0x51   : > { %1735 = dma.done.wait (%p2505_p3), [#allocation6], 512  }
  0x52   : > { %1737 = vsyncadd (%p2505_p3), [#allocation6], 4294966784  ;;  %vm333_vm0 = vcmask 261120   ;;  %v322_v0 = vld [vmem:[%s2488_s1] sm:$0xff]  ;;  %v323_v1 = vld [vmem:[%s2488_s1 + $0x8] sm:$0xff]  ;;  %s783_s15 = sld [smem:[#allocation2]] }
  0x53   : > { %v324_v2 = vld [vmem:[%s2488_s1 + $0x10] sm:$0xff]  ;;  %v1524_v3 = vpack.c.bf16 %v323_v1, %v322_v0  ;;  %v325_v4 = vld [vmem:[%s2488_s1 + $0x18] sm:$0xff]  ;;  %v1944_v5 = vld [vmem:[%s1921_s23] sm:$0xff]  ;;  %s1269_s16 = sshll.u32 %s1258_s5, 5 }
  0x54   : > { %v1528_v6 = vpack.c.bf16 %v325_v4, %v324_v2  ;;  %1420 = vmatprep.mubr.msk.f32.mxu0 %vm333_vm0, %v1944_v5  ;;  %1476 = vmatprep.mubr.msk.f32.mxu1 %vm333_vm0, %v1944_v5  ;;  %v1951_v7 = vld [vmem:[%s1921_s23 + $0x8] sm:$0xff]  ;;  %v1954_v8 = vld [vmem:[%s1921_s23 + $0x10] sm:$0xff]  ;;  %v1959_v9 = vld [vmem:[%s1921_s23 + $0x18] sm:$0xff]  ;;  %p285_p7 = scmp.lt.s32.totalorder %s1269_s16, 63 }
  0x55   : > { %1525 = vmatprep.subr.bf16.mxu0 %v1524_v3  ;;  %v881_v10 = vld [vmem:[#allocation5] sm:$0xff]  ;;  %v882_v11 = vld [vmem:[#allocation5 + $0x8] sm:$0xff]  ;;  %v883_v12 = vld [vmem:[#allocation5 + $0x10] sm:$0xff] }
  0x56   : > { %1527 = vmatpush3.bf16.msra.mxu0 %v1524_v3  ;;  %v1964_v13 = vld [vmem:[%s1921_s23 + $0x20] sm:$0xff]  ;;  %v1532_v14 = vpack.c.bf16 %v882_v11, %v881_v10  ;;  %v884_v15 = vld [vmem:[#allocation5 + $0x18] sm:$0xff]  ;;  %v1971_v17 = vld [vmem:[%s1921_s23 + $0x28] sm:$0xff]  ;;  %s2511_s16 = smov (!%p285_p7, %s1269_s16), 63 }
  0x57   : > { %1529 = vmatprep.subr.bf16.mxu0 %v1528_v6  ;;  %v1536_v16 = vpack.c.bf16 %v884_v15, %v883_v12  ;;  %v1974_v18 = vld [vmem:[%s1921_s23 + $0x30] sm:$0xff]  ;;  %v1981_v19 = vld [vmem:[%s1921_s23 + $0x38] sm:$0xff]  ;;  %v1984_v20 = vld [vmem:[%s1921_s23 + $0x40] sm:$0xff]  ;;  %s1270_s26 = sshll.u32 %s2511_s16, 3 }
  0x58   : > { %1533 = vmatprep.subr.bf16.mxu1 %v1532_v14  ;;  %v1993_v21 = vld [vmem:[%s1921_s23 + $0x48] sm:$0xff]  ;;  %v1998_v22 = vld [vmem:[%s1921_s23 + $0x50] sm:$0xff]  ;;  %v2007_v23 = vld [vmem:[%s1921_s23 + $0x58] sm:$0xff]  ;;  %s2354_s18 = scalar_lea.vmem %s2493_s6, %s1270_s26 }
  0x59   : > { %1535 = vmatpush3.bf16.msra.mxu1 %v1532_v14  ;;  %v2012_v24 = vld [vmem:[%s1921_s23 + $0x60] sm:$0xff]  ;;  %v2021_v25 = vld [vmem:[%s1921_s23 + $0x68] sm:$0xff]  ;;  %v2026_v26 = vld [vmem:[%s1921_s23 + $0x70] sm:$0xff] }
  0x5a   : > { %1531 = vmatpush3.bf16.msra.mxu0 %v1528_v6  ;;  %1537 = vmatprep.subr.bf16.mxu1 %v1536_v16  ;;  %v2035_v27 = vld [vmem:[%s1921_s23 + $0x78] sm:$0xff]  ;;  %v2040_v28 = vld [vmem:[%s1921_s23 + $0x80] sm:$0xff]  ;;  %v2049_v29 = vld [vmem:[%s1921_s23 + $0x88] sm:$0xff] }
  0x5b   : > { %v2054_v30 = vld [vmem:[%s1921_s23 + $0x90] sm:$0xff]  ;;  %v2063_v31 = vld [vmem:[%s1921_s23 + $0x98] sm:$0xff]  ;;  %v2068_v32 = vld [vmem:[%s1921_s23 + $0xa0] sm:$0xff] }
  0x5c   : > { %v2077_v33 = vld [vmem:[%s1921_s23 + $0xa8] sm:$0xff]  ;;  %v2082_v34 = vld [vmem:[%s1921_s23 + $0xb0] sm:$0xff]  ;;  %v2091_v35 = vld [vmem:[%s1921_s23 + $0xb8] sm:$0xff] }
  0x5d   : > { %1421 = vmatmul.mubr.msk.f32.vlgmr.msra.gmra.mrb[0].mxu0 %vm333_vm0, %v1951_v7  ;;  %1539 = vmatpush3.bf16.msra.mxu1 %v1536_v16  ;;  %v2096_v36 = vld [vmem:[%s1921_s23 + $0xc0] sm:$0xff]  ;;  %v2105_v37 = vld [vmem:[%s1921_s23 + $0xc8] sm:$0xff]  ;;  %v2110_v38 = vld [vmem:[%s1921_s23 + $0xd0] sm:$0xff] }
  0x5e   : > { %1423 = vmatprep.mubr.msk.f32.mxu0 %vm333_vm0, %v1954_v8  ;;  %v2119_v39 = vld [vmem:[%s1921_s23 + $0xd8] sm:$0xff]  ;;  %v2124_v40 = vld [vmem:[%s1921_s23 + $0xe0] sm:$0xff]  ;;  %v2133_v41 = vld [vmem:[%s1921_s23 + $0xe8] sm:$0xff] }
  0x5f   : > { %v2138_v42 = vld [vmem:[%s1921_s23 + $0xf0] sm:$0xff]  ;;  %v2147_v43 = vld [vmem:[%s1921_s23 + $0xf8] sm:$0xff]  ;;  %v2170_v44 = vld [vmem:[%s2489_s2] ss:$0 sm:$0xff] }
  0x60   : > { %1477 = vmatmul.mubr.msk.f32.vlgmr.msra.gmra.mrb[0].mxu1 %vm333_vm0, %v1951_v7 }
  0x61   : > { %1424 = vmatmul.mubr.msk.f32.gmra.mrb[2].mxu0 %vm333_vm0, %v1959_v9  ;;  %1479 = vmatprep.mubr.msk.f32.mxu1 %vm333_vm0, %v1954_v8 }
  0x62   : > { %1426 = vmatprep.mubr.msk.f32.mxu0 %vm333_vm0, %v1964_v13 }
  0x64   : > { %1480 = vmatmul.mubr.msk.f32.gmra.mrb[2].mxu1 %vm333_vm0, %v1959_v9 }
  0x65   : > { %1427 = vmatmul.mubr.msk.f32.gmra.mrb[4].mxu0 %vm333_vm0, %v1971_v17  ;;  %1482 = vmatprep.mubr.msk.f32.mxu1 %vm333_vm0, %v1964_v13 }
  0x66   : > { %1429 = vmatprep.mubr.msk.f32.mxu0 %vm333_vm0, %v1974_v18 }
  0x68   : > { %1483 = vmatmul.mubr.msk.f32.gmra.mrb[4].mxu1 %vm333_vm0, %v1971_v17 }
  0x69   : > { %1430 = vmatmul.mubr.msk.f32.gmra.mrb[6].mxu0 %vm333_vm0, %v1981_v19  ;;  %1485 = vmatprep.mubr.msk.f32.mxu1 %vm333_vm0, %v1974_v18 }
  0x6a   : > { %1432 = vmatprep.mubr.msk.f32.mxu0 %vm333_vm0, %v1984_v20 }
  0x6c   : > { %1486 = vmatmul.mubr.msk.f32.gmra.mrb[6].mxu1 %vm333_vm0, %v1981_v19 }
  0x6d   : > { %1433 = vmatmul.mubr.msk.f32.gmra.mrb[8].mxu0 %vm333_vm0, %v1993_v21  ;;  %1488 = vmatprep.mubr.msk.f32.mxu1 %vm333_vm0, %v1984_v20 }
  0x6e   : > { %1435 = vmatprep.mubr.msk.f32.mxu0 %vm333_vm0, %v1998_v22 }
  0x70   : > { %1489 = vmatmul.mubr.msk.f32.gmra.mrb[8].mxu1 %vm333_vm0, %v1993_v21 }
  0x71   : > { %1436 = vmatmul.mubr.msk.f32.gmra.mrb[10].mxu0 %vm333_vm0, %v2007_v23  ;;  %1491 = vmatprep.mubr.msk.f32.mxu1 %vm333_vm0, %v1998_v22 }
  0x72   : > { %1438 = vmatprep.mubr.msk.f32.mxu0 %vm333_vm0, %v2012_v24 }
  0x74   : > { %1492 = vmatmul.mubr.msk.f32.gmra.mrb[10].mxu1 %vm333_vm0, %v2007_v23 }
  0x75   : > { %1439 = vmatmul.mubr.msk.f32.gmra.mrb[12].mxu0 %vm333_vm0, %v2021_v25  ;;  %1494 = vmatprep.mubr.msk.f32.mxu1 %vm333_vm0, %v2012_v24 }
  0x76   : > { %1441 = vmatprep.mubr.msk.f32.mxu0 %vm333_vm0, %v2026_v26 }
  0x78   : > { %1495 = vmatmul.mubr.msk.f32.gmra.mrb[12].mxu1 %vm333_vm0, %v2021_v25 }
  0x79   : > { %1442 = vmatmul.mubr.msk.f32.gmra.mrb[14].mxu0 %vm333_vm0, %v2035_v27  ;;  %1497 = vmatprep.mubr.msk.f32.mxu1 %vm333_vm0, %v2026_v26 }
  0x7a   : > { %1444 = vmatprep.mubr.msk.f32.mxu0 %vm333_vm0, %v2040_v28 }
  0x7c   : > { %1498 = vmatmul.mubr.msk.f32.gmra.mrb[14].mxu1 %vm333_vm0, %v2035_v27 }
  0x7d   : > { %1445 = vmatmul.mubr.msk.f32.gmra.mrb[16].mxu0 %vm333_vm0, %v2049_v29  ;;  %1500 = vmatprep.mubr.msk.f32.mxu1 %vm333_vm0, %v2040_v28 }
  0x7e   : > { %1447 = vmatprep.mubr.msk.f32.mxu0 %vm333_vm0, %v2054_v30 }
  0x80   : > { %1501 = vmatmul.mubr.msk.f32.gmra.mrb[16].mxu1 %vm333_vm0, %v2049_v29 }
  0x81   : > { %1448 = vmatmul.mubr.msk.f32.gmra.mrb[18].mxu0 %vm333_vm0, %v2063_v31  ;;  %1503 = vmatprep.mubr.msk.f32.mxu1 %vm333_vm0, %v2054_v30 }
  0x82   : > { %1450 = vmatprep.mubr.msk.f32.mxu0 %vm333_vm0, %v2068_v32 }
  0x84   : > { %1504 = vmatmul.mubr.msk.f32.gmra.mrb[18].mxu1 %vm333_vm0, %v2063_v31 }
  0x85   : > { %1451 = vmatmul.mubr.msk.f32.gmra.mrb[20].mxu0 %vm333_vm0, %v2077_v33  ;;  %1506 = vmatprep.mubr.msk.f32.mxu1 %vm333_vm0, %v2068_v32 }
  0x86   : > { %1453 = vmatprep.mubr.msk.f32.mxu0 %vm333_vm0, %v2082_v34 }
  0x88   : > { %1507 = vmatmul.mubr.msk.f32.gmra.mrb[20].mxu1 %vm333_vm0, %v2077_v33 }
  0x89   : > { %1454 = vmatmul.mubr.msk.f32.gmra.mrb[22].mxu0 %vm333_vm0, %v2091_v35  ;;  %1509 = vmatprep.mubr.msk.f32.mxu1 %vm333_vm0, %v2082_v34 }
  0x8a   : > { %1456 = vmatprep.mubr.msk.f32.mxu0 %vm333_vm0, %v2096_v36 }
  0x8c   : > { %1510 = vmatmul.mubr.msk.f32.gmra.mrb[22].mxu1 %vm333_vm0, %v2091_v35 }
  0x8d   : > { %1457 = vmatmul.mubr.msk.f32.gmra.mrb[24].mxu0 %vm333_vm0, %v2105_v37  ;;  %1512 = vmatprep.mubr.msk.f32.mxu1 %vm333_vm0, %v2096_v36 }
  0x8e   : > { %1459 = vmatprep.mubr.msk.f32.mxu0 %vm333_vm0, %v2110_v38 }
  0x90   : > { %1513 = vmatmul.mubr.msk.f32.gmra.mrb[24].mxu1 %vm333_vm0, %v2105_v37 }
  0x91   : > { %1460 = vmatmul.mubr.msk.f32.gmra.mrb[26].mxu0 %vm333_vm0, %v2119_v39  ;;  %1515 = vmatprep.mubr.msk.f32.mxu1 %vm333_vm0, %v2110_v38 }
  0x92   : > { %1462 = vmatprep.mubr.msk.f32.mxu0 %vm333_vm0, %v2124_v40 }
  0x94   : > { %1516 = vmatmul.mubr.msk.f32.gmra.mrb[26].mxu1 %vm333_vm0, %v2119_v39 }
  0x95   : > { %1463 = vmatmul.mubr.msk.f32.gmra.mrb[28].mxu0 %vm333_vm0, %v2133_v41  ;;  %1518 = vmatprep.mubr.msk.f32.mxu1 %vm333_vm0, %v2124_v40 }
  0x96   : > { %1465 = vmatprep.mubr.msk.f32.mxu0 %vm333_vm0, %v2138_v42 }
  0x98   : > { %1519 = vmatmul.mubr.msk.f32.gmra.mrb[28].mxu1 %vm333_vm0, %v2133_v41 }
  0x99   : > { %1466 = vmatmul.mubr.msk.f32.gmra.mrb[30].mxu0 %vm333_vm0, %v2147_v43  ;;  %1521 = vmatprep.mubr.msk.f32.mxu1 %vm333_vm0, %v2138_v42 }
  0x9c   : > { %1522 = vmatmul.mubr.msk.f32.gmra.mrb[30].mxu1 %vm333_vm0, %v2147_v43 }
 0x130   : > { %v1422_v45 = vpop.f32.mrb[0].mxu0 }
 0x131   : > { %v502_v46 = vadd.f32 %v1422_v45, %v2170_v44  ;;  %v496_v47 = vpop.f32.mrb[1].mxu0 }
 0x132   : > { %v497_v48 = vadd.f32 %v2170_v44, %v496_v47 }
 0x133   : > { %v656_v49 = vmul.f32 %v502_v46, %v1951_v7 }
 0x134   : > { %v1425_v50 = vpop.f32.mrb[2].mxu0  ;;  %v655_v54 = vmul.f32 %v497_v48, %v1944_v5 }
 0x135   : > { %v512_v51 = vadd.f32 %v1425_v50, %v2170_v44  ;;  %v506_v52 = vpop.f32.mrb[3].mxu0  ;;  %v690_v53 = vsel %vm333_vm0, %v656_v49, 0.0 }
 0x136   : > { %v507_v55 = vadd.f32 %v2170_v44, %v506_v52  ;;  %691 = vadd.xlane.f32.xlu0 %v690_v53  ;;  %v687_v60 = vsel %vm333_vm0, %v655_v54, 0.0 }
 0x137   : > { %v658_v56 = vmul.f32 %v512_v51, %v1959_v9 }
 0x138   : > { %v1428_v57 = vpop.f32.mrb[4].mxu0  ;;  %v657_v62 = vmul.f32 %v507_v55, %v1954_v8 }
 0x139   : > { %v696_v58 = vsel %vm333_vm0, %v658_v56, 0.0  ;;  %v522_v59 = vadd.f32 %v1428_v57, %v2170_v44  ;;  %v516_v61 = vpop.f32.mrb[5].mxu0 }
 0x13a   : > { %697 = vadd.xlane.f32.xlu1 %v696_v58  ;;  %688 = vadd.xlane.f32.xlu0 %v687_v60  ;;  %v517_v63 = vadd.f32 %v2170_v44, %v516_v61  ;;  %v693_v4 = vsel %vm333_vm0, %v657_v62, 0.0 }
 0x13b   : > { %v660_v0 = vmul.f32 %v522_v59, %v1971_v17 }
 0x13c   : > { %v1431_v1 = vpop.f32.mrb[6].mxu0  ;;  %v659_v2 = vmul.f32 %v517_v63, %v1964_v13 }
 0x13d   : > { %v532_v3 = vadd.f32 %v1431_v1, %v2170_v44  ;;  %v526_v5 = vpop.f32.mrb[7].mxu0  ;;  %v702_v8 = vsel %vm333_vm0, %v660_v0, 0.0 }
 0x13e   : > { %694 = vadd.xlane.f32.xlu1 %v693_v4  ;;  %v527_v6 = vadd.f32 %v2170_v44, %v526_v5  ;;  %v699_v7 = vsel %vm333_vm0, %v659_v2, 0.0 }
 0x13f   : > { %700 = vadd.xlane.f32.xlu0 %v699_v7  ;;  %v662_v9 = vmul.f32 %v532_v3, %v1981_v19 }
 0x140   : > { %v1434_v10 = vpop.f32.mrb[8].mxu0  ;;  %v661_v11 = vmul.f32 %v527_v6, %v1974_v18 }
 0x141   : > { %v542_v12 = vadd.f32 %v1434_v10, %v2170_v44  ;;  %v536_v13 = vpop.f32.mrb[9].mxu0  ;;  %v708_v16 = vsel %vm333_vm0, %v662_v9, 0.0 }
 0x142   : > { %703 = vadd.xlane.f32.xlu1 %v702_v8  ;;  %v537_v14 = vadd.f32 %v2170_v44, %v536_v13  ;;  %v705_v15 = vsel %vm333_vm0, %v661_v11, 0.0 }
 0x143   : > { %706 = vadd.xlane.f32.xlu0 %v705_v15  ;;  %v664_v17 = vmul.f32 %v542_v12, %v1993_v21 }
 0x144   : > { %v1437_v45 = vpop.f32.mrb[10].mxu0  ;;  %v663_v46 = vmul.f32 %v537_v14, %v1984_v20 }
 0x145   : > { %v552_v19 = vadd.f32 %v1437_v45, %v2170_v44  ;;  %v546_v47 = vpop.f32.mrb[11].mxu0  ;;  %v714_v49 = vsel %vm333_vm0, %v664_v17, 0.0 }
 0x146   : > { %709 = vadd.xlane.f32.xlu1 %v708_v16  ;;  %v547_v18 = vadd.f32 %v2170_v44, %v546_v47  ;;  %v711_v48 = vsel %vm333_vm0, %v663_v46, 0.0 }
 0x147   : > { %712 = vadd.xlane.f32.xlu0 %v711_v48  ;;  %v666_v50 = vmul.f32 %v552_v19, %v2007_v23 }
 0x148   : > { %v1440_v51 = vpop.f32.mrb[12].mxu0  ;;  %v665_v52 = vmul.f32 %v547_v18, %v1998_v22 }
 0x149   : > { %v562_v21 = vadd.f32 %v1440_v51, %v2170_v44  ;;  %v556_v53 = vpop.f32.mrb[13].mxu0  ;;  %v720_v55 = vsel %vm333_vm0, %v666_v50, 0.0 }
 0x14a   : > { %715 = vadd.xlane.f32.xlu1 %v714_v49  ;;  %v557_v20 = vadd.f32 %v2170_v44, %v556_v53  ;;  %v717_v54 = vsel %vm333_vm0, %v665_v52, 0.0 }
 0x14b   : > { %718 = vadd.xlane.f32.xlu0 %v717_v54  ;;  %v668_v56 = vmul.f32 %v562_v21, %v2021_v25 }
 0x14c   : > { %v1443_v57 = vpop.f32.mrb[14].mxu0  ;;  %v667_v58 = vmul.f32 %v557_v20, %v2012_v24  ;;  %v2219_v24 = vpop.f32.mrb[0].mxu1 }
 0x14d   : > { %v572_v23 = vadd.f32 %v1443_v57, %v2170_v44  ;;  %v566_v59 = vpop.f32.mrb[15].mxu0  ;;  %v726_v61 = vsel %vm333_vm0, %v668_v56, 0.0  ;;  %v2226_v7 = vpop.f32.mrb[1].mxu1 }
 0x14e   : > { %721 = vadd.xlane.f32.xlu1 %v720_v55  ;;  %v567_v22 = vadd.f32 %v2170_v44, %v566_v59  ;;  %v723_v60 = vsel %vm333_vm0, %v667_v58, 0.0  ;;  %v2229_v9 = vpop.f32.mrb[2].mxu1 }
 0x14f   : > { %724 = vadd.xlane.f32.xlu0 %v723_v60  ;;  %v670_v62 = vmul.f32 %v572_v23, %v2035_v27  ;;  %v2236_v14 = vpop.f32.mrb[3].mxu1 }
 0x150   : > { %v1446_v63 = vpop.f32.mrb[16].mxu0  ;;  %v669_v0 = vmul.f32 %v567_v22, %v2026_v26  ;;  %v2243_v47 = vpop.f32.mrb[4].mxu1 }
 0x151   : > { %v582_v25 = vadd.f32 %v1446_v63, %v2170_v44  ;;  %v576_v1 = vpop.f32.mrb[17].mxu0  ;;  %v732_v4 = vsel %vm333_vm0, %v670_v62, 0.0  ;;  %v2246_v18 = vpop.f32.mrb[5].mxu1 }
 0x152   : > { %727 = vadd.xlane.f32.xlu1 %v726_v61  ;;  %v577_v2 = vadd.f32 %v2170_v44, %v576_v1  ;;  %v729_v3 = vsel %vm333_vm0, %v669_v0, 0.0  ;;  %v2253_v21 = vpop.f32.mrb[6].mxu1 }
 0x153   : > { %730 = vadd.xlane.f32.xlu0 %v729_v3  ;;  %v672_v5 = vmul.f32 %v582_v25, %v2049_v29  ;;  %v2256_v20 = vpop.f32.mrb[7].mxu1 }
 0x154   : > { %v1449_v6 = vpop.f32.mrb[18].mxu0  ;;  %v671_v27 = vmul.f32 %v577_v2, %v2040_v28  ;;  %v2263_v23 = vpop.f32.mrb[8].mxu1 }
 0x155   : > { %v592_v26 = vadd.f32 %v1449_v6, %v2170_v44  ;;  %v586_v8 = vpop.f32.mrb[19].mxu0  ;;  %v738_v12 = vsel %vm333_vm0, %v672_v5, 0.0  ;;  %v2266_v22 = vpop.f32.mrb[9].mxu1 }
 0x156   : > { %733 = vadd.xlane.f32.xlu1 %v732_v4  ;;  %v587_v10 = vadd.f32 %v2170_v44, %v586_v8  ;;  %v735_v11 = vsel %vm333_vm0, %v671_v27, 0.0  ;;  %v2273_v25 = vpop.f32.mrb[10].mxu1 }
 0x157   : > { %736 = vadd.xlane.f32.xlu0 %v735_v11  ;;  %v674_v29 = vmul.f32 %v592_v26, %v2063_v31  ;;  %v2276_v2 = vpop.f32.mrb[11].mxu1 }
 0x158   : > { %v1452_v13 = vpop.f32.mrb[20].mxu0  ;;  %v673_v28 = vmul.f32 %v587_v10, %v2054_v30  ;;  %v2283_v26 = vpop.f32.mrb[12].mxu1 }
 0x159   : > { %v602_v15 = vadd.f32 %v1452_v13, %v2170_v44  ;;  %v596_v16 = vpop.f32.mrb[21].mxu0  ;;  %v744_v46 = vsel %vm333_vm0, %v674_v29, 0.0  ;;  %v2286_v10 = vpop.f32.mrb[13].mxu1 }
 0x15a   : > { %739 = vadd.xlane.f32.xlu1 %v738_v12  ;;  %v597_v17 = vadd.f32 %v2170_v44, %v596_v16  ;;  %v741_v45 = vsel %vm333_vm0, %v673_v28, 0.0 }
 0x15b   : > { %742 = vadd.xlane.f32.xlu0 %v741_v45  ;;  %v676_v19 = vmul.f32 %v602_v15, %v2077_v33  ;;  %v2293_v15 = vpop.f32.mrb[14].mxu1 }
 0x15c   : > { %v1455_v31 = vpop.f32.mrb[22].mxu0  ;;  %v675_v30 = vmul.f32 %v597_v17, %v2068_v32 }
 0x15d   : > { %v612_v48 = vadd.f32 %v1455_v31, %v2170_v44  ;;  %v606_v49 = vpop.f32.mrb[23].mxu0  ;;  %v750_v52 = vsel %vm333_vm0, %v676_v19, 0.0 }
 0x15e   : > { %745 = vadd.xlane.f32.xlu1 %v744_v46  ;;  %v607_v50 = vadd.f32 %v2170_v44, %v606_v49  ;;  %v747_v51 = vsel %vm333_vm0, %v675_v30, 0.0 }
 0x15f   : > { %748 = vadd.xlane.f32.xlu0 %v747_v51  ;;  %v678_v33 = vmul.f32 %v612_v48, %v2091_v35 }
 0x160   : > { %v1458_v53 = vpop.f32.mrb[24].mxu0  ;;  %v677_v32 = vmul.f32 %v607_v50, %v2082_v34 }
 0x161   : > { %v622_v54 = vadd.f32 %v1458_v53, %v2170_v44  ;;  %v616_v55 = vpop.f32.mrb[25].mxu0  ;;  %v756_v58 = vsel %vm333_vm0, %v678_v33, 0.0 }
 0x162   : > { %751 = vadd.xlane.f32.xlu1 %v750_v52  ;;  %v617_v56 = vadd.f32 %v2170_v44, %v616_v55  ;;  %v753_v57 = vsel %vm333_vm0, %v677_v32, 0.0 }
 0x163   : > { %754 = vadd.xlane.f32.xlu0 %v753_v57  ;;  %v680_v35 = vmul.f32 %v622_v54, %v2105_v37  ;;  %v2331_v54 = vld [vmem:[%s2491_s4] ss:$0 sm:$0xff]  ;;  %v2338_v57 = vstv %s783_s15 }
 0x164   : > { %v1461_v59 = vpop.f32.mrb[26].mxu0  ;;  %v679_v34 = vmul.f32 %v617_v56, %v2096_v36 }
 0x165   : > { %v632_v60 = vadd.f32 %v1461_v59, %v2170_v44  ;;  %v626_v61 = vpop.f32.mrb[27].mxu0  ;;  %v762_v0 = vsel %vm333_vm0, %v680_v35, 0.0 }
 0x166   : > { %757 = vadd.xlane.f32.xlu1 %v756_v58  ;;  %v627_v62 = vadd.f32 %v2170_v44, %v626_v61  ;;  %v759_v63 = vsel %vm333_vm0, %v679_v34, 0.0 }
 0x167   : > { %760 = vadd.xlane.f32.xlu0 %v759_v63  ;;  %v682_v37 = vmul.f32 %v632_v60, %v2119_v39 }
 0x168   : > { %v1464_v1 = vpop.f32.mrb[28].mxu0  ;;  %v681_v36 = vmul.f32 %v627_v62, %v2110_v38 }
 0x169   : > { %v642_v3 = vadd.f32 %v1464_v1, %v2170_v44  ;;  %v636_v4 = vpop.f32.mrb[29].mxu0  ;;  %v768_v27 = vsel %vm333_vm0, %v682_v37, 0.0 }
 0x16a   : > { %763 = vadd.xlane.f32.xlu1 %v762_v0  ;;  %v637_v5 = vadd.f32 %v2170_v44, %v636_v4  ;;  %v765_v6 = vsel %vm333_vm0, %v681_v36, 0.0 }
 0x16b   : > { %766 = vadd.xlane.f32.xlu0 %v765_v6  ;;  %v684_v39 = vmul.f32 %v642_v3, %v2133_v41 }
 0x16c   : > { %v1467_v8 = vpop.f32.mrb[30].mxu0  ;;  %v683_v38 = vmul.f32 %v637_v5, %v2124_v40  ;;  %v2296_v40 = vpop.f32.mrb[15].mxu1 }
 0x16d   : > { %v652_v11 = vadd.f32 %v1467_v8, %v2170_v44  ;;  %v646_v12 = vpop.f32.mrb[31].mxu0  ;;  %v774_v28 = vsel %vm333_vm0, %v684_v39, 0.0 }
 0x16e   : > { %769 = vadd.xlane.f32.xlu1 %v768_v27  ;;  %v647_v29 = vadd.f32 %v2170_v44, %v646_v12  ;;  %v771_v13 = vsel %vm333_vm0, %v683_v38, 0.0  ;;  %v2300_v44 = vpop.f32.mrb[16].mxu1  ;;  %v964_v27 = vadd.f32 %v2219_v24, %v2331_v54  ;;  %v974_v24 = vadd.f32 %v2229_v9, %v2331_v54 }
 0x16f   : > { %772 = vadd.xlane.f32.xlu0 %v771_v13  ;;  %v686_v41 = vmul.f32 %v652_v11, %v2147_v43  ;;  %v2302_v46 = vpop.f32.mrb[17].mxu1  ;;  %v969_v9 = vadd.f32 %v2331_v54, %v2236_v14 }
 0x170   : > { %v685_v16 = vmul.f32 %v647_v29, %v2138_v42  ;;  %v2304_v19 = vpop.f32.mrb[18].mxu1 }
 0x171   : > { %v780_v45 = vsel %vm333_vm0, %v686_v41, 0.0  ;;  %v2306_v43 = vpop.f32.mrb[19].mxu1  ;;  %v959_v41 = vadd.f32 %v2331_v54, %v2226_v7 }
 0x172   : > { %775 = vadd.xlane.f32.xlu1 %v774_v28  ;;  %v777_v17 = vsel %vm333_vm0, %v685_v16, 0.0  ;;  %v2308_v31 = vpop.f32.mrb[20].mxu1 }
 0x173   : > { %778 = vadd.xlane.f32.xlu0 %v777_v17  ;;  %v2310_v42 = vpop.f32.mrb[21].mxu1 }
 0x174   : > { %v2312_v30 = vpop.f32.mrb[22].mxu1 }
 0x175   : > { %v2314_v48 = vpop.f32.mrb[23].mxu1 }
 0x176   : > { %781 = vadd.xlane.f32.xlu1 %v780_v45  ;;  %v2316_v49 = vpop.f32.mrb[24].mxu1 }
 0x177   : > { %v2318_v50 = vpop.f32.mrb[25].mxu1 }
 0x178   : > { %v2320_v51 = vpop.f32.mrb[26].mxu1 }
 0x179   : > { %v2322_v52 = vpop.f32.mrb[27].mxu1 }
 0x17a   : > { %v2324_v33 = vpop.f32.mrb[28].mxu1 }
 0x17b   : > { %v2326_v53 = vpop.f32.mrb[29].mxu1 }
 0x17c   : > { %v1523_v32 = vpop.f32.mrb[30].mxu1 }
 0x17d   : > { %v2333_v55 = vpop.f32.mrb[31].mxu1  ;;  %v2336_v56 = vadd.f32 %v1523_v32, %v2331_v54 }
 0x1c3   : > { %v692_v58 = vpop.xlane.xlu0 %691 }
 0x1c4   : > { %v786_v35 = vadd.f32 %v2338_v57, %v692_v58 }
 0x1c6   : > { %v818_v59 = vmax.f32 %v786_v35, 1e-12 }
 0x1c7   : > { %v698_v34 = vpop.xlane.xlu1 %697  ;;  %v689_v60 = vpop.xlane.xlu0 %688 }
 0x1c8   : > { %1592 = vrsqrt.f32 %v818_v59  ;;  %v788_v61 = vadd.f32 %v2338_v57, %v698_v34  ;;  %v785_v62 = vadd.f32 %v2338_v57, %v689_v60 }
 0x1ca   : > { %v820_v63 = vmax.f32 %v788_v61, 1e-12  ;;  %v817_v0 = vmax.f32 %v785_v62, 1e-12 }
 0x1cb   : > { %v695_v37 = vpop.xlane.xlu1 %694 }
 0x1cc   : > { %1594 = vrsqrt.f32 %v820_v63  ;;  %v787_v1 = vadd.f32 %v2338_v57, %v695_v37  ;;  %v701_v36 = vpop.xlane.xlu0 %700  ;;  %v979_v63 = vadd.f32 %v2331_v54, %v2246_v18 }
 0x1cd   : > { %1596 = vrsqrt.f32 %v817_v0  ;;  %v789_v3 = vadd.f32 %v2338_v57, %v701_v36 }
 0x1ce   : > { %v819_v4 = vmax.f32 %v787_v1, 1e-12 }
 0x1cf   : > { %v821_v5 = vmax.f32 %v789_v3, 1e-12  ;;  %v704_v6 = vpop.xlane.xlu1 %703  ;;  %v984_v3 = vadd.f32 %v2243_v47, %v2331_v54 }
 0x1d0   : > { %1598 = vrsqrt.f32 %v819_v4  ;;  %v790_v39 = vadd.f32 %v2338_v57, %v704_v6  ;;  %v707_v8 = vpop.xlane.xlu0 %706 }
 0x1d1   : > { %1600 = vrsqrt.f32 %v821_v5  ;;  %v791_v38 = vadd.f32 %v2338_v57, %v707_v8 }
 0x1d2   : > { %v1593_v11 = vpop.eup %1592  ;;  %v822_v12 = vmax.f32 %v790_v39, 1e-12  ;;  %v989_v39 = vadd.f32 %v2331_v54, %v2256_v20 }
 0x1d3   : > { %v1118_v29 = vmul.f32 %v1593_v11, %v964_v27  ;;  %v823_v13 = vmax.f32 %v791_v38, 1e-12  ;;  %v710_v28 = vpop.xlane.xlu1 %709 }
 0x1d4   : > { %1602 = vrsqrt.f32 %v822_v12  ;;  %v792_v16 = vadd.f32 %v2338_v57, %v710_v28  ;;  %v713_v17 = vpop.xlane.xlu0 %712 }
 0x1d5   : > { %1150 = vst [vmem:[%s2354_s18 + $0x8] sm:$0xff] %v1118_v29  ;;  %1604 = vrsqrt.f32 %v823_v13  ;;  %v793_v45 = vadd.f32 %v2338_v57, %v713_v17  ;;  %v994_v29 = vadd.f32 %v2253_v21, %v2331_v54 }
 0x1d6   : > { %v1595_v32 = vpop.eup %1594  ;;  %v824_v58 = vmax.f32 %v792_v16, 1e-12  ;;  %v999_v16 = vadd.f32 %v2331_v54, %v2266_v22 }
 0x1d7   : > { %v1597_v35 = vpop.eup %1596  ;;  %v1120_v59 = vmul.f32 %v1595_v32, %v974_v24  ;;  %v825_v34 = vmax.f32 %v793_v45, 1e-12  ;;  %v716_v60 = vpop.xlane.xlu1 %715 }
 0x1d8   : > { %v1117_v61 = vmul.f32 %v1597_v35, %v959_v41  ;;  %1606 = vrsqrt.f32 %v824_v58  ;;  %v794_v7 = vadd.f32 %v2338_v57, %v716_v60  ;;  %v719_v62 = vpop.xlane.xlu0 %718  ;;  %v1004_v35 = vadd.f32 %v2263_v23, %v2331_v54 }
 0x1d9   : > { %1152 = vst [vmem:[%s2354_s18 + $0x18] sm:$0xff] %v1120_v59  ;;  %1608 = vrsqrt.f32 %v825_v34  ;;  %v795_v0 = vadd.f32 %v2338_v57, %v719_v62 }
 0x1da   : > { %v1599_v37 = vpop.eup %1598  ;;  %1149 = vst [vmem:[%s2354_s18] sm:$0xff] %v1117_v61  ;;  %v826_v1 = vmax.f32 %v794_v7, 1e-12  ;;  %v1009_v61 = vadd.f32 %v2331_v54, %v2276_v2 }
 0x1db   : > { %v1601_v36 = vpop.eup %1600  ;;  %v1119_v14 = vmul.f32 %v1599_v37, %v969_v9  ;;  %v827_v4 = vmax.f32 %v795_v0, 1e-12  ;;  %v722_v5 = vpop.xlane.xlu1 %721  ;;  %v1014_v37 = vadd.f32 %v2273_v25, %v2331_v54 }
 0x1dc   : > { %1610 = vrsqrt.f32 %v826_v1  ;;  %v1121_v6 = vmul.f32 %v1601_v36, %v979_v63  ;;  %v796_v18 = vadd.f32 %v2338_v57, %v722_v5  ;;  %v725_v27 = vpop.xlane.xlu0 %724 }
 0x1dd   : > { %1151 = vst [vmem:[%s2354_s18 + $0x10] sm:$0xff] %v1119_v14  ;;  %1612 = vrsqrt.f32 %v827_v4  ;;  %v797_v8 = vadd.f32 %v2338_v57, %v725_v27  ;;  %v1019_v4 = vadd.f32 %v2331_v54, %v2286_v10 }
 0x1de   : > { %v1603_v38 = vpop.eup %1602  ;;  %1153 = vst [vmem:[%s2354_s18 + $0x20] sm:$0xff] %v1121_v6  ;;  %v828_v11 = vmax.f32 %v796_v18, 1e-12 }
 0x1df   : > { %v1605_v47 = vpop.eup %1604  ;;  %v1122_v12 = vmul.f32 %v1603_v38, %v984_v3  ;;  %v829_v13 = vmax.f32 %v797_v8, 1e-12  ;;  %v728_v28 = vpop.xlane.xlu1 %727 }
 0x1e0   : > { %1614 = vrsqrt.f32 %v828_v11  ;;  %v1123_v24 = vmul.f32 %v1605_v47, %v989_v39  ;;  %v798_v20 = vadd.f32 %v2338_v57, %v728_v28  ;;  %v731_v41 = vpop.xlane.xlu0 %730  ;;  %v1024_v39 = vadd.f32 %v2283_v26, %v2331_v54 }
 0x1e1   : > { %1154 = vst [vmem:[%s2354_s18 + $0x28] sm:$0xff] %v1122_v12  ;;  %1616 = vrsqrt.f32 %v829_v13  ;;  %v799_v17 = vadd.f32 %v2338_v57, %v731_v41  ;;  %v1029_v12 = vadd.f32 %v2331_v54, %v2296_v40 }
 0x1e2   : > { %v1607_v45 = vpop.eup %1606  ;;  %1155 = vst [vmem:[%s2354_s18 + $0x30] sm:$0xff] %v1123_v24  ;;  %v830_v32 = vmax.f32 %v798_v20, 1e-12  ;;  %v1034_v20 = vadd.f32 %v2293_v15, %v2331_v54 }
 0x1e3   : > { %v1609_v21 = vpop.eup %1608  ;;  %v1124_v58 = vmul.f32 %v1607_v45, %v994_v29  ;;  %v831_v59 = vmax.f32 %v799_v17, 1e-12  ;;  %v734_v34 = vpop.xlane.xlu1 %733 }
 0x1e4   : > { %1618 = vrsqrt.f32 %v830_v32  ;;  %v1125_v9 = vmul.f32 %v1609_v21, %v999_v16  ;;  %v800_v22 = vadd.f32 %v2338_v57, %v734_v34  ;;  %v737_v60 = vpop.xlane.xlu0 %736  ;;  %v1039_v32 = vadd.f32 %v2331_v54, %v2302_v46 }
 0x1e5   : > { %1156 = vst [vmem:[%s2354_s18 + $0x38] sm:$0xff] %v1124_v58  ;;  %1620 = vrsqrt.f32 %v831_v59  ;;  %v801_v7 = vadd.f32 %v2338_v57, %v737_v60  ;;  %v1044_v34 = vadd.f32 %v2300_v44, %v2331_v54 }
 0x1e6   : > { %v1611_v62 = vpop.eup %1610  ;;  %1157 = vst [vmem:[%s2354_s18 + $0x40] sm:$0xff] %v1125_v9  ;;  %v832_v63 = vmax.f32 %v800_v22, 1e-12 }
 0x1e7   : > { %v1613_v23 = vpop.eup %1612  ;;  %v1126_v0 = vmul.f32 %v1611_v62, %v1004_v35  ;;  %v833_v1 = vmax.f32 %v801_v7, 1e-12  ;;  %v740_v36 = vpop.xlane.xlu1 %739  ;;  %v1049_v7 = vadd.f32 %v2331_v54, %v2306_v43 }
 0x1e8   : > { %1622 = vrsqrt.f32 %v832_v63  ;;  %v1127_v14 = vmul.f32 %v1613_v23, %v1009_v61  ;;  %v802_v2 = vadd.f32 %v2338_v57, %v740_v36  ;;  %v743_v3 = vpop.xlane.xlu0 %742 }
 0x1e9   : > { %1158 = vst [vmem:[%s2354_s18 + $0x48] sm:$0xff] %v1126_v0  ;;  %1624 = vrsqrt.f32 %v833_v1  ;;  %v803_v5 = vadd.f32 %v2338_v57, %v743_v3  ;;  %v1059_v3 = vadd.f32 %v2331_v54, %v2310_v42 }
 0x1ea   : > { %v1615_v6 = vpop.eup %1614  ;;  %1159 = vst [vmem:[%s2354_s18 + $0x50] sm:$0xff] %v1127_v14  ;;  %v834_v18 = vmax.f32 %v802_v2, 1e-12 }
 0x1eb   : > { %v1617_v25 = vpop.eup %1616  ;;  %v1128_v27 = vmul.f32 %v1615_v6, %v1014_v37  ;;  %v835_v8 = vmax.f32 %v803_v5, 1e-12  ;;  %v746_v38 = vpop.xlane.xlu1 %745  ;;  %v1054_v37 = vadd.f32 %v2304_v19, %v2331_v54 }
 0x1ec   : > { %1626 = vrsqrt.f32 %v834_v18  ;;  %v1129_v11 = vmul.f32 %v1617_v25, %v1019_v4  ;;  %v804_v10 = vadd.f32 %v2338_v57, %v746_v38  ;;  %v749_v47 = vpop.xlane.xlu0 %748  ;;  %v1064_v25 = vadd.f32 %v2308_v31, %v2331_v54 }
 0x1ed   : > { %1160 = vst [vmem:[%s2354_s18 + $0x58] sm:$0xff] %v1128_v27  ;;  %1628 = vrsqrt.f32 %v835_v8  ;;  %v805_v29 = vadd.f32 %v2338_v57, %v749_v47 }
 0x1ee   : > { %v1619_v13 = vpop.eup %1618  ;;  %1161 = vst [vmem:[%s2354_s18 + $0x60] sm:$0xff] %v1129_v11  ;;  %v836_v28 = vmax.f32 %v804_v10, 1e-12  ;;  %v1069_v11 = vadd.f32 %v2331_v54, %v2314_v48 }
 0x1ef   : > { %v1621_v26 = vpop.eup %1620  ;;  %v1130_v24 = vmul.f32 %v1619_v13, %v1024_v39  ;;  %v837_v41 = vmax.f32 %v805_v29, 1e-12  ;;  %v752_v16 = vpop.xlane.xlu1 %751  ;;  %v1074_v13 = vadd.f32 %v2312_v30, %v2331_v54 }
 0x1f0   : > { %1630 = vrsqrt.f32 %v836_v28  ;;  %v1131_v17 = vmul.f32 %v1621_v26, %v1029_v12  ;;  %v806_v40 = vadd.f32 %v2338_v57, %v752_v16  ;;  %v755_v45 = vpop.xlane.xlu0 %754 }
 0x1f1   : > { %1162 = vst [vmem:[%s2354_s18 + $0x68] sm:$0xff] %v1130_v24  ;;  %1632 = vrsqrt.f32 %v837_v41  ;;  %v807_v21 = vadd.f32 %v2338_v57, %v755_v45  ;;  %v1079_v41 = vadd.f32 %v2331_v54, %v2318_v50 }
 0x1f2   : > { %v1623_v58 = vpop.eup %1622  ;;  %1163 = vst [vmem:[%s2354_s18 + $0x70] sm:$0xff] %v1131_v17  ;;  %v838_v35 = vmax.f32 %v806_v40, 1e-12 }
 0x1f3   : > { %v1625_v15 = vpop.eup %1624  ;;  %v1132_v59 = vmul.f32 %v1623_v58, %v1034_v20  ;;  %v839_v9 = vmax.f32 %v807_v21, 1e-12  ;;  %v758_v22 = vpop.xlane.xlu1 %757 }
 0x1f4   : > { %1634 = vrsqrt.f32 %v838_v35  ;;  %v1133_v60 = vmul.f32 %v1625_v15, %v1039_v32  ;;  %v808_v46 = vadd.f32 %v2338_v57, %v758_v22  ;;  %v761_v61 = vpop.xlane.xlu0 %760  ;;  %v1084_v32 = vadd.f32 %v2316_v49, %v2331_v54 }
 0x1f5   : > { %1164 = vst [vmem:[%s2354_s18 + $0x78] sm:$0xff] %v1132_v59  ;;  %1636 = vrsqrt.f32 %v839_v9  ;;  %v809_v62 = vadd.f32 %v2338_v57, %v761_v61  ;;  %v1089_v15 = vadd.f32 %v2331_v54, %v2322_v52  ;;  %v1094_v22 = vadd.f32 %v2320_v51, %v2331_v54 }
 0x1f6   : > { %v1627_v63 = vpop.eup %1626  ;;  %1165 = vst [vmem:[%s2354_s18 + $0x80] sm:$0xff] %v1133_v60  ;;  %v840_v23 = vmax.f32 %v808_v46, 1e-12  ;;  %v1109_v51 = vadd.f32 %v2331_v54, %v2333_v55 }
 0x1f7   : > { %v1629_v44 = vpop.eup %1628  ;;  %v1134_v0 = vmul.f32 %v1627_v63, %v1044_v34  ;;  %v841_v1 = vmax.f32 %v809_v62, 1e-12  ;;  %v764_v36 = vpop.xlane.xlu1 %763 }
 0x1f8   : > { %1638 = vrsqrt.f32 %v840_v23  ;;  %v1135_v14 = vmul.f32 %v1629_v44, %v1049_v7  ;;  %v810_v43 = vadd.f32 %v2338_v57, %v764_v36  ;;  %v767_v2 = vpop.xlane.xlu0 %766  ;;  %v1104_v7 = vadd.f32 %v2324_v33, %v2331_v54 }
 0x1f9   : > { %1166 = vst [vmem:[%s2354_s18 + $0x88] sm:$0xff] %v1134_v0  ;;  %1640 = vrsqrt.f32 %v841_v1  ;;  %v811_v4 = vadd.f32 %v2338_v57, %v767_v2 }
 0x1fa   : > { %v1631_v5 = vpop.eup %1630  ;;  %1167 = vst [vmem:[%s2354_s18 + $0x90] sm:$0xff] %v1135_v14  ;;  %v842_v6 = vmax.f32 %v810_v43, 1e-12 }
 0x1fb   : > { %v1633_v19 = vpop.eup %1632  ;;  %v1136_v18 = vmul.f32 %v1631_v5, %v1054_v37  ;;  %v843_v27 = vmax.f32 %v811_v4, 1e-12  ;;  %v770_v39 = vpop.xlane.xlu1 %769 }
 0x1fc   : > { %1642 = vrsqrt.f32 %v842_v6  ;;  %v1137_v8 = vmul.f32 %v1633_v19, %v1059_v3  ;;  %v812_v42 = vadd.f32 %v2338_v57, %v770_v39  ;;  %v773_v38 = vpop.xlane.xlu0 %772 }
 0x1fd   : > { %1168 = vst [vmem:[%s2354_s18 + $0x98] sm:$0xff] %v1136_v18  ;;  %1644 = vrsqrt.f32 %v843_v27  ;;  %v813_v10 = vadd.f32 %v2338_v57, %v773_v38 }
 0x1fe   : > { %v1635_v47 = vpop.eup %1634  ;;  %1169 = vst [vmem:[%s2354_s18 + $0xa0] sm:$0xff] %v1137_v8  ;;  %v844_v12 = vmax.f32 %v812_v42, 1e-12 }
 0x1ff   : > { %v1637_v31 = vpop.eup %1636  ;;  %v1138_v29 = vmul.f32 %v1635_v47, %v1064_v25  ;;  %v845_v28 = vmax.f32 %v813_v10, 1e-12  ;;  %v776_v26 = vpop.xlane.xlu1 %775 }
 0x200   : > { %1646 = vrsqrt.f32 %v844_v12  ;;  %v1139_v24 = vmul.f32 %v1637_v31, %v1069_v11  ;;  %v814_v48 = vadd.f32 %v2338_v57, %v776_v26  ;;  %v779_v20 = vpop.xlane.xlu0 %778 }
 0x201   : > { %1170 = vst [vmem:[%s2354_s18 + $0xa8] sm:$0xff] %v1138_v29  ;;  %1648 = vrsqrt.f32 %v845_v28  ;;  %v815_v16 = vadd.f32 %v2338_v57, %v779_v20 }
 0x202   : > { %v1639_v17 = vpop.eup %1638  ;;  %1171 = vst [vmem:[%s2354_s18 + $0xb0] sm:$0xff] %v1139_v24  ;;  %v846_v40 = vmax.f32 %v814_v48, 1e-12 }
 0x203   : > { %v1641_v30 = vpop.eup %1640  ;;  %v1140_v45 = vmul.f32 %v1639_v17, %v1074_v13  ;;  %v847_v21 = vmax.f32 %v815_v16, 1e-12  ;;  %v782_v58 = vpop.xlane.xlu1 %781 }
 0x204   : > { %1650 = vrsqrt.f32 %v846_v40  ;;  %v1141_v35 = vmul.f32 %v1641_v30, %v1079_v41  ;;  %v816_v50 = vadd.f32 %v2338_v57, %v782_v58  ;;  %v1099_v57 = vadd.f32 %v2331_v54, %v2326_v53 }
 0x205   : > { %1172 = vst [vmem:[%s2354_s18 + $0xb8] sm:$0xff] %v1140_v45  ;;  %1652 = vrsqrt.f32 %v847_v21 }
 0x206   : > { %v1643_v59 = vpop.eup %1642  ;;  %1173 = vst [vmem:[%s2354_s18 + $0xc0] sm:$0xff] %v1141_v35  ;;  %v848_v34 = vmax.f32 %v816_v50, 1e-12 }
 0x207   : > { %v1645_v9 = vpop.eup %1644  ;;  %v1142_v49 = vmul.f32 %v1643_v59, %v1084_v32 }
 0x208   : > { %1654 = vrsqrt.f32 %v848_v34  ;;  %v1143_v60 = vmul.f32 %v1645_v9, %v1089_v15 }
 0x209   : > { %1174 = vst [vmem:[%s2354_s18 + $0xc8] sm:$0xff] %v1142_v49 }
 0x20a   : > { %v1647_v52 = vpop.eup %1646  ;;  %1175 = vst [vmem:[%s2354_s18 + $0xd0] sm:$0xff] %v1143_v60 }
 0x20b   : > { %v1649_v46 = vpop.eup %1648  ;;  %v1144_v61 = vmul.f32 %v1647_v52, %v1094_v22 }
 0x20c   : > { %v1145_v62 = vmul.f32 %v1649_v46, %v1099_v57 }
 0x20d   : > { %1176 = vst [vmem:[%s2354_s18 + $0xd8] sm:$0xff] %v1144_v61 }
 0x20e   : > { %v1651_v63 = vpop.eup %1650  ;;  %1177 = vst [vmem:[%s2354_s18 + $0xe0] sm:$0xff] %v1145_v62 }
 0x20f   : > { %v1653_v23 = vpop.eup %1652  ;;  %v1146_v44 = vmul.f32 %v1651_v63, %v1104_v7 }
 0x210   : > { %v1147_v53 = vmul.f32 %v1653_v23, %v1109_v51 }
 0x211   : > { %1178 = vst [vmem:[%s2354_s18 + $0xe8] sm:$0xff] %v1146_v44 }
 0x212   : > { %v1655_v0 = vpop.eup %1654  ;;  %1179 = vst [vmem:[%s2354_s18 + $0xf0] sm:$0xff] %v1147_v53 }
 0x213   : > { %v1148_v37 = vmul.f32 %v1655_v0, %v2336_v56 }
 0x215   : > { %1180 = vst [vmem:[%s2354_s18 + $0xf8] sm:$0xff] %v1148_v37 }
 0x216 PF: > { %p18_p6 = scmp.ge.s32.totalorder %s1843_s9, 4   ;;  %s2506_s23 = smov %s1744_s24 }
 0x217   : > { %s2507_s24 = smov %s1748_s25  ;;  %s2508_s25 = smov %s1872_s30 }
 0x218   : > { %s2509_s26 = smov %s1843_s9  ;;  %20 = sbr.rel (!%p18_p6) target bundleno = 6 (0x6), region = 88 }
 0x21f   :  { %1203 = vsyncpa [#allocation4], 1 }
 0x220   :  { %1205 = vsyncpa [#allocation4 + $0x1], 1 }
 0x221   :  { %1206 = vsyncpa [#allocation6], 1 }

</bundles_post_ra>
